<compile_context>
chip_gen: v7x
topology: tpu7x:2x2x1
jax: 0.10.0
libtpu: 0.0.40
codegen_flags: <defaults>
</compile_context>

<pallas_src>
import jax
import jax.numpy as jnp
from jax.experimental import pallas as pl
from jax.experimental.pallas import tpu as pltpu


# ---------------------------------------------------------------------------
# helpers
# ---------------------------------------------------------------------------
def _round_up(v, m):
    return (v + m - 1) // m * m


def _tensorcores_per_device():
    # 2 TensorCores per Pallas device on megacore-style chips (v4 / v7x);
    # v5e / v6e are 1 TC per chip. Fall back to 1 if unknown.
    try:
        kind = jax.devices()[0].device_kind.lower()
    except Exception:
        return 1
    return 2 if ("v4" in kind or "v7" in kind or "7x" in kind) else 1


def _pick_nb(N, L, C_pad, K, n_w, n_cores, budget=20 * 1024 * 1024):
    """Largest batch-chunk nb (divisor of N) whose per-step footprint fits the
    VMEM budget; only force >=2 grid steps on multi-TensorCore chips."""
    def fits(nb):
        lw = _round_up(nb * L, 128)
        io = 2 * 2 * C_pad * lw * 4                   # x + out, double-buffered
        act = (3 * K + 8) * C_pad * lw * 4            # rough live-activation bound
        wts = 2 * (n_w * C_pad * K * C_pad + C_pad * 128) * 4
        return io + act + wts <= budget

    divisors = [d for d in range(1, N + 1) if N % d == 0]
    min_steps = 2 if (n_cores >= 2 and N >= 2) else 1
    cands = [d for d in divisors if fits(d) and N // d >= min_steps]
    if not cands:
        cands = [d for d in divisors if fits(d)] or [1]
    return max(cands)


# ---------------------------------------------------------------------------
# Fused Pallas kernel: all TemporalBlocks + AttentionFusion for one batch chunk
# ---------------------------------------------------------------------------
def make_tcn_kernel(level_meta, K, L, LW, C_pad):
    shifts = sorted({(K - 1 - k) * m["dilation"]
                     for m in level_meta for k in range(K)} - {0})

    def kernel(x_ref, w_ref, aux_ref, o_ref):
        # x_ref:   (C_pad, LW)   nb batch segments of length L along lanes
        # w_ref:   (n_w, C_pad, K*C_pad)  packed tap-folded conv + 1x1 weights
        # aux_ref: (C_pad, 128)  packed biases + softmaxed attention columns
        lane = jax.lax.broadcasted_iota(jnp.int32, (1, LW), 1)
        if L & (L - 1) == 0:                         # position within segment
            pos = jax.lax.bitwise_and(lane, L - 1)
        else:
            pos = lane % L
        # Hoisted causal masks: one per distinct shift, reused across convs.
        masks = {s: pos >= s for s in shifts if s < L}

        def shifted(h, s):
            if s == 0:
                return h
            if s >= L:
                return jnp.zeros_like(h)
            # roll over the folded lane axis; mask zeroes the per-segment head
            # so nothing leaks between batch segments (or from the pad tail).
            return jnp.where(masks[s], pltpu.roll(h, s, axis=1), 0.0)

        def causal_conv(h, w_idx, b_col, dilation):
            cols = [shifted(h, (K - 1 - k) * dilation) for k in range(K)]
            hcol = cols[0] if K == 1 else jnp.concatenate(cols, axis=0)
            return (jnp.dot(w_ref[w_idx], hcol,
                            preferred_element_type=jnp.float32)
                    + aux_ref[:, b_col:b_col + 1])

        h = x_ref[...].astype(jnp.float32)
        fused = None
        for m in level_meta:
            d = m["dilation"]
            # conv1 -> chomp -> relu  (dropout = identity in eval mode)
            a1 = jnp.maximum(causal_conv(h, m["w1"], m["b1"], d), 0.0)
            # TODO(synk): nn.Dropout omitted (inference-mode identity; no RNG).
            # conv2 -> chomp -> relu
            a2 = jnp.maximum(causal_conv(a1, m["w2"], m["b2"], d), 0.0)
            # residual (1x1 downsample when C_in != C_out)
            if m["has_ds"]:
                wd = w_ref[m["wd"]][:, :C_pad]
                res = (jnp.dot(wd, h, preferred_element_type=jnp.float32)
                       + aux_ref[:, m["bd"]:m["bd"] + 1])
            else:
                res = h
            h = jnp.maximum(a2 + res, 0.0)           # block output stays on-chip
            # incremental attention-weighted accumulation (no stacked array)
            contrib = h * aux_ref[:, m["sm"]:m["sm"] + 1]
            fused = contrib if fused is None else fused + contrib
        o_ref[...] = fused.astype(o_ref.dtype)       # lane-dense (LW % 128 == 0)

    return kernel


# ---------------------------------------------------------------------------
# Wrapper: layout plumbing + single pallas_call for the whole forward pass
# ---------------------------------------------------------------------------
def temporal_conv_net(x, layer_params, attn_w, kernel_size):
    N, C_in, L = x.shape
    K = kernel_size
    num_levels = len(layer_params)
    C_last = layer_params[-1]["w1"].shape[0]
    assert all(p["w1"].shape[0] == C_last for p in layer_params), \
        "torch.stack in the reference model requires equal channel counts per level"
    C_pad = _round_up(max(C_in, C_last, 8), 8)       # sublane-aligned channels

    n_w = 2 * num_levels + sum(1 for p in layer_params if "wd" in p)
    nb = _pick_nb(N, L, C_pad, K, n_w, _tensorcores_per_device())
    g = N // nb
    LW = _round_up(nb * L, 128)                      # lane-dense block width

    # ---- pack weights (one array) and biases + attention (one aux array) ----
    def fold_conv(w):                                # (C_out, C_in_l, K) -> (C_pad, K*C_pad)
        c_out, c_in_l, _ = w.shape
        wt = jnp.transpose(w, (0, 2, 1))             # columns ordered [tap0|tap1|...]
        wt = jnp.pad(wt, ((0, C_pad - c_out), (0, 0), (0, C_pad - c_in_l)))
        return wt.reshape(C_pad, K * C_pad)

    def pad_bias(b):                                 # (C_out, 1) -> (C_pad,)
        return jnp.pad(b[:, 0], (0, C_pad - b.shape[0]))

    sm_t = jax.nn.softmax(attn_w, axis=0).T          # (C_last, num_levels), hoisted
    sm_t = jnp.pad(sm_t, ((0, C_pad - C_last), (0, 0)))

    w_list, aux_cols, level_meta = [], [], []
    for i, p in enumerate(layer_params):
        m = {"dilation": 2 ** i, "has_ds": "wd" in p}
        m["w1"] = len(w_list); w_list.append(fold_conv(p["w1"]))
        m["w2"] = len(w_list); w_list.append(fold_conv(p["w2"]))
        m["b1"] = len(aux_cols); aux_cols.append(pad_bias(p["b1"]))
        m["b2"] = len(aux_cols); aux_cols.append(pad_bias(p["b2"]))
        if m["has_ds"]:
            wd = jnp.pad(p["wd"], ((0, C_pad - p["wd"].shape[0]),
                                   (0, C_pad - p["wd"].shape[1])))
            wd = jnp.pad(wd, ((0, 0), (0, (K - 1) * C_pad)))
            m["wd"] = len(w_list); w_list.append(wd)
            m["bd"] = len(aux_cols); aux_cols.append(pad_bias(p["bd"]))
        level_meta.append(m)
    for i, m in enumerate(level_meta):
        m["sm"] = len(aux_cols); aux_cols.append(sm_t[:, i])

    w_all = jnp.stack(w_list, axis=0)                # (n_w, C_pad, K*C_pad)
    aux = jnp.stack(aux_cols, axis=1)                # (C_pad, ncols)
    aux = jnp.pad(aux, ((0, 0), (0, _round_up(aux.shape[1], 128) - aux.shape[1])))

    # ---- fold batch into the lane axis: (N, C_in, L) -> (C_pad, g*LW) ----
    x_f = x.reshape(g, nb, C_in, L).transpose(0, 2, 1, 3).reshape(g, C_in, nb * L)
    x_f = jnp.pad(x_f, ((0, 0), (0, C_pad - C_in), (0, LW - nb * L)))
    x_f = x_f.transpose(1, 0, 2).reshape(C_pad, g * LW)

    kernel = make_tcn_kernel(level_meta, K, L, LW, C_pad)
    out = pl.pallas_call(
        kernel,
        out_shape=jax.ShapeDtypeStruct((C_pad, g * LW), jnp.float32),
        grid=(g,),
        in_specs=[pl.BlockSpec((C_pad, LW), lambda n: (0, n)),
                  pl.BlockSpec(w_all.shape, lambda n: (0, 0, 0)),
                  pl.BlockSpec(aux.shape, lambda n: (0, 0))],
        out_specs=pl.BlockSpec((C_pad, LW), lambda n: (0, n)),
        compiler_params=pltpu.CompilerParams(
            dimension_semantics=("parallel",),
            vmem_limit_bytes=32 * 1024 * 1024),
    )(x_f, w_all, aux)

    # ---- un-fold: (C_pad, g*LW) -> (N, C_last, L) (free layout plumbing) ----
    out = out.reshape(C_pad, g, LW)[:, :, :nb * L].reshape(C_pad, g, nb, L)
    out = out.transpose(1, 2, 0, 3).reshape(N, C_pad, L)
    return out[:, :C_last, :]


# ---------------------------------------------------------------------------
# Deterministic parameter init (mirrors the PyTorch __init__ shapes)
# ---------------------------------------------------------------------------
def init_params(key, num_inputs, num_channels, kernel_size):
    # PyTorch weight_norm with g initialized to ||v|| is the identity at init,
    # so the effective conv weight equals v.
    K = kernel_size
    layers = []
    c_prev = num_inputs
    for i, c_out in enumerate(num_channels):
        c_in = c_prev
        ks = jax.random.split(jax.random.fold_in(key, i), 6)
        p = {"w1": 0.01 * jax.random.normal(ks[0], (c_out, c_in, K), jnp.float32),
             "b1": 0.01 * jax.random.normal(ks[1], (c_out, 1), jnp.float32),
             "w2": 0.01 * jax.random.normal(ks[2], (c_out, c_out, K), jnp.float32),
             "b2": 0.01 * jax.random.normal(ks[3], (c_out, 1), jnp.float32)}
        if c_in != c_out:                            # 1x1 downsample on residual path
            p["wd"] = 0.01 * jax.random.normal(ks[4], (c_out, c_in), jnp.float32)
            p["bd"] = 0.01 * jax.random.normal(ks[5], (c_out, 1), jnp.float32)
        layers.append(p)
        c_prev = c_out
    attn_w = jax.random.normal(jax.random.fold_in(key, 1000),
                               (len(num_channels), num_channels[-1]), jnp.float32)
    return layers, attn_w


# ---------------------------------------------------------------------------
# Pure-JAX reference (correctness check)
# ---------------------------------------------------------------------------
def _causal_conv_ref(x, w, b, dilation):
    C_out, C_in, K = w.shape
    L = x.shape[2]
    pad = (K - 1) * dilation
    xpad = jnp.pad(x, ((0, 0), (0, 0), (pad, 0)))
    out = sum(jnp.einsum("oc,ncl->nol", w[:, :, k],
                         xpad[:, :, k * dilation:k * dilation + L],
                         precision=jax.lax.Precision.HIGHEST)
              for k in range(K))
    return out + b[None]


def tcn_reference(x, layer_params, attn_w, kernel_size):
    feats = []
    h = x
    for i, p in enumerate(layer_params):
        d = 2 ** i
        a = jax.nn.relu(_causal_conv_ref(h, p["w1"], p["b1"], d))
        a = jax.nn.relu(_causal_conv_ref(a, p["w2"], p["b2"], d))
        if "wd" in p:
            res = jnp.einsum("oc,ncl->nol", p["wd"], h,
                             precision=jax.lax.Precision.HIGHEST) + p["bd"][None]
        else:
            res = h
        h = jax.nn.relu(a + res)
        feats.append(h)
    stacked = jnp.stack(feats, axis=0)
    scores = jax.nn.softmax(attn_w, axis=0)[:, None, :, None]
    return jnp.sum(stacked * scores, axis=0)


# ---------------------------------------------------------------------------
if __name__ == "__main__":
    key = jax.random.PRNGKey(0)
    N, C_in, L = 2, 4, 16
    num_channels = [8, 8, 8]        # equal channels so torch.stack / fusion is well-defined
    kernel_size = 2

    x = jax.random.normal(jax.random.fold_in(key, 42), (N, C_in, L), jnp.float32)
    layer_params, attn_w = init_params(jax.random.fold_in(key, 7),
                                       C_in, num_channels, kernel_size)

    out = temporal_conv_net(x, layer_params, attn_w, kernel_size)
    out = jax.block_until_ready(out)

    ref = tcn_reference(x, layer_params, attn_w, kernel_size)
    assert out.shape == (N, num_channels[-1], L)
    assert jnp.allclose(out, ref, atol=1e-4, rtol=1e-4), \
        float(jnp.max(jnp.abs(out - ref)))
    print("KERNEL_OK")
</pallas_src>

<mosaic_0001>
module attributes {stable_mosaic.version = 11 : i64} {
  func.func @kernel(%arg0: i32, %arg1: memref<8x128xf32, #tpu.memory_space<vmem>>, %arg2: memref<7x8x16xf32, #tpu.memory_space<vmem>>, %arg3: memref<8x128xf32, #tpu.memory_space<vmem>>, %arg4: memref<8x128xf32, #tpu.memory_space<vmem>>) attributes {dimension_semantics = [#tpu.dimension_semantics<parallel>], iteration_bounds = array<i64: 1>, scalar_prefetch = 0 : i64, scratch_operands = 0 : i64, tpu.core_type = #tpu.core_type<tc>, window_params = [{transform_indices = @transform_0, window_bounds = array<i64: 8, 128>}, {pipeline_mode = #tpu.pipeline_mode<synchronous>, transform_indices = @transform_1, window_bounds = array<i64: 7, 8, 16>}, {pipeline_mode = #tpu.pipeline_mode<synchronous>, transform_indices = @transform_2, window_bounds = array<i64: 8, 128>}, {transform_indices = @transform_3, window_bounds = array<i64: 8, 128>}]} {
    %0 = tpu.iota {dimensions = array<i32: 1>} : vector<1x128xi32>
    %c15_i32 = arith.constant 15 : i32
    %1 = vector.broadcast %c15_i32 : i32 to vector<1x128xi32>
    %2 = arith.andi %0, %1 : vector<1x128xi32>
    %c1_i32 = arith.constant 1 : i32
    %3 = vector.broadcast %c1_i32 : i32 to vector<1x128xi32>
    %4 = arith.cmpi sge, %2, %3 : vector<1x128xi32>
    %c2_i32 = arith.constant 2 : i32
    %5 = vector.broadcast %c2_i32 : i32 to vector<1x128xi32>
    %6 = arith.cmpi sge, %2, %5 : vector<1x128xi32>
    %c4_i32 = arith.constant 4 : i32
    %7 = vector.broadcast %c4_i32 : i32 to vector<1x128xi32>
    %8 = arith.cmpi sge, %2, %7 : vector<1x128xi32>
    %c0 = arith.constant 0 : index
    %c0_0 = arith.constant 0 : index
    %9 = vector.load %arg1[%c0, %c0_0] : memref<8x128xf32, #tpu.memory_space<vmem>>, vector<8x128xf32>
    %c1_i32_1 = arith.constant 1 : i32
    %10 = tpu.dynamic_rotate %9 by %c1_i32_1 dim 1 : vector<8x128xf32>, i32 -> vector<8x128xf32>
    %cst = arith.constant 0.000000e+00 : f32
    %11 = vector.shape_cast %4 : vector<1x128xi1> to vector<1x128xi1>
    %12 = vector.broadcast %11 : vector<1x128xi1> to vector<8x128xi1>
    %13 = vector.broadcast %cst : f32 to vector<8x128xf32>
    %14 = arith.select %12, %10, %13 : vector<8x128xi1>, vector<8x128xf32>
    %15 = tpu.concatenate %14, %9 in 0 : vector<8x128xf32>, vector<8x128xf32> -> vector<16x128xf32>
    %c0_2 = arith.constant 0 : index
    %c0_3 = arith.constant 0 : index
    %c0_4 = arith.constant 0 : index
    %16 = vector.load %arg2[%c0_2, %c0_3, %c0_4] : memref<7x8x16xf32, #tpu.memory_space<vmem>>, vector<1x8x16xf32>
    %17 = vector.shape_cast %16 : vector<1x8x16xf32> to vector<8x16xf32>
    %cst_5 = arith.constant dense<0.000000e+00> : vector<8x128xf32>
    %18 = tpu.matmul %17, %15, %cst_5 {dimension_numbers = #tpu.dot_dimension_numbers<[1], [0], [0], [1], [0, 0, 1, 1], [], []>} : vector<8x16xf32>, vector<16x128xf32>, vector<8x128xf32> -> vector<8x128xf32>
    %c0_6 = arith.constant 0 : index
    %c0_7 = arith.constant 0 : index
    %19 = vector.load %arg3[%c0_6, %c0_7] : memref<8x128xf32, #tpu.memory_space<vmem>>, vector<8x1xf32>
    %20 = vector.broadcast %19 : vector<8x1xf32> to vector<8x128xf32>
    %21 = arith.addf %18, %20 : vector<8x128xf32>
    %cst_8 = arith.constant 0.000000e+00 : f32
    %22 = vector.broadcast %cst_8 : f32 to vector<8x128xf32>
    %23 = arith.maximumf %21, %22 : vector<8x128xf32>
    %c1_i32_9 = arith.constant 1 : i32
    %24 = tpu.dynamic_rotate %23 by %c1_i32_9 dim 1 : vector<8x128xf32>, i32 -> vector<8x128xf32>
    %cst_10 = arith.constant 0.000000e+00 : f32
    %25 = vector.shape_cast %4 : vector<1x128xi1> to vector<1x128xi1>
    %26 = vector.broadcast %25 : vector<1x128xi1> to vector<8x128xi1>
    %27 = vector.broadcast %cst_10 : f32 to vector<8x128xf32>
    %28 = arith.select %26, %24, %27 : vector<8x128xi1>, vector<8x128xf32>
    %29 = tpu.concatenate %28, %23 in 0 : vector<8x128xf32>, vector<8x128xf32> -> vector<16x128xf32>
    %c1 = arith.constant 1 : index
    %c0_11 = arith.constant 0 : index
    %c0_12 = arith.constant 0 : index
    %30 = vector.load %arg2[%c1, %c0_11, %c0_12] : memref<7x8x16xf32, #tpu.memory_space<vmem>>, vector<1x8x16xf32>
    %31 = vector.shape_cast %30 : vector<1x8x16xf32> to vector<8x16xf32>
    %cst_13 = arith.constant dense<0.000000e+00> : vector<8x128xf32>
    %32 = tpu.matmul %31, %29, %cst_13 {dimension_numbers = #tpu.dot_dimension_numbers<[1], [0], [0], [1], [0, 0, 1, 1], [], []>} : vector<8x16xf32>, vector<16x128xf32>, vector<8x128xf32> -> vector<8x128xf32>
    %c0_14 = arith.constant 0 : index
    %c1_15 = arith.constant 1 : index
    %33 = vector.load %arg3[%c0_14, %c1_15] : memref<8x128xf32, #tpu.memory_space<vmem>>, vector<8x1xf32>
    %34 = vector.broadcast %33 : vector<8x1xf32> to vector<8x128xf32>
    %35 = arith.addf %32, %34 : vector<8x128xf32>
    %cst_16 = arith.constant 0.000000e+00 : f32
    %36 = vector.broadcast %cst_16 : f32 to vector<8x128xf32>
    %37 = arith.maximumf %35, %36 : vector<8x128xf32>
    %c2 = arith.constant 2 : index
    %c0_17 = arith.constant 0 : index
    %c0_18 = arith.constant 0 : index
    %38 = vector.load %arg2[%c2, %c0_17, %c0_18] : memref<7x8x16xf32, #tpu.memory_space<vmem>>, vector<1x8x16xf32>
    %39 = vector.shape_cast %38 : vector<1x8x16xf32> to vector<8x16xf32>
    %40 = vector.extract_strided_slice %39 {offsets = [0, 0], sizes = [8, 8], strides = [1, 1]} : vector<8x16xf32> to vector<8x8xf32>
    %cst_19 = arith.constant dense<0.000000e+00> : vector<8x128xf32>
    %41 = tpu.matmul %40, %9, %cst_19 {dimension_numbers = #tpu.dot_dimension_numbers<[1], [0], [0], [1], [0, 0, 1, 1], [], []>} : vector<8x8xf32>, vector<8x128xf32>, vector<8x128xf32> -> vector<8x128xf32>
    %c0_20 = arith.constant 0 : index
    %c2_21 = arith.constant 2 : index
    %42 = vector.load %arg3[%c0_20, %c2_21] : memref<8x128xf32, #tpu.memory_space<vmem>>, vector<8x1xf32>
    %43 = vector.broadcast %42 : vector<8x1xf32> to vector<8x128xf32>
    %44 = arith.addf %41, %43 : vector<8x128xf32>
    %45 = arith.addf %37, %44 : vector<8x128xf32>
    %cst_22 = arith.constant 0.000000e+00 : f32
    %46 = vector.broadcast %cst_22 : f32 to vector<8x128xf32>
    %47 = arith.maximumf %45, %46 : vector<8x128xf32>
    %c0_23 = arith.constant 0 : index
    %c7 = arith.constant 7 : index
    %48 = vector.load %arg3[%c0_23, %c7] : memref<8x128xf32, #tpu.memory_space<vmem>>, vector<8x1xf32>
    %49 = vector.broadcast %48 : vector<8x1xf32> to vector<8x128xf32>
    %50 = arith.mulf %47, %49 : vector<8x128xf32>
    %c2_i32_24 = arith.constant 2 : i32
    %51 = tpu.dynamic_rotate %47 by %c2_i32_24 dim 1 : vector<8x128xf32>, i32 -> vector<8x128xf32>
    %cst_25 = arith.constant 0.000000e+00 : f32
    %52 = vector.shape_cast %6 : vector<1x128xi1> to vector<1x128xi1>
    %53 = vector.broadcast %52 : vector<1x128xi1> to vector<8x128xi1>
    %54 = vector.broadcast %cst_25 : f32 to vector<8x128xf32>
    %55 = arith.select %53, %51, %54 : vector<8x128xi1>, vector<8x128xf32>
    %56 = tpu.concatenate %55, %47 in 0 : vector<8x128xf32>, vector<8x128xf32> -> vector<16x128xf32>
    %c3 = arith.constant 3 : index
    %c0_26 = arith.constant 0 : index
    %c0_27 = arith.constant 0 : index
    %57 = vector.load %arg2[%c3, %c0_26, %c0_27] : memref<7x8x16xf32, #tpu.memory_space<vmem>>, vector<1x8x16xf32>
    %58 = vector.shape_cast %57 : vector<1x8x16xf32> to vector<8x16xf32>
    %cst_28 = arith.constant dense<0.000000e+00> : vector<8x128xf32>
    %59 = tpu.matmul %58, %56, %cst_28 {dimension_numbers = #tpu.dot_dimension_numbers<[1], [0], [0], [1], [0, 0, 1, 1], [], []>} : vector<8x16xf32>, vector<16x128xf32>, vector<8x128xf32> -> vector<8x128xf32>
    %c0_29 = arith.constant 0 : index
    %c3_30 = arith.constant 3 : index
    %60 = vector.load %arg3[%c0_29, %c3_30] : memref<8x128xf32, #tpu.memory_space<vmem>>, vector<8x1xf32>
    %61 = vector.broadcast %60 : vector<8x1xf32> to vector<8x128xf32>
    %62 = arith.addf %59, %61 : vector<8x128xf32>
    %cst_31 = arith.constant 0.000000e+00 : f32
    %63 = vector.broadcast %cst_31 : f32 to vector<8x128xf32>
    %64 = arith.maximumf %62, %63 : vector<8x128xf32>
    %c2_i32_32 = arith.constant 2 : i32
    %65 = tpu.dynamic_rotate %64 by %c2_i32_32 dim 1 : vector<8x128xf32>, i32 -> vector<8x128xf32>
    %cst_33 = arith.constant 0.000000e+00 : f32
    %66 = vector.shape_cast %6 : vector<1x128xi1> to vector<1x128xi1>
    %67 = vector.broadcast %66 : vector<1x128xi1> to vector<8x128xi1>
    %68 = vector.broadcast %cst_33 : f32 to vector<8x128xf32>
    %69 = arith.select %67, %65, %68 : vector<8x128xi1>, vector<8x128xf32>
    %70 = tpu.concatenate %69, %64 in 0 : vector<8x128xf32>, vector<8x128xf32> -> vector<16x128xf32>
    %c4 = arith.constant 4 : index
    %c0_34 = arith.constant 0 : index
    %c0_35 = arith.constant 0 : index
    %71 = vector.load %arg2[%c4, %c0_34, %c0_35] : memref<7x8x16xf32, #tpu.memory_space<vmem>>, vector<1x8x16xf32>
    %72 = vector.shape_cast %71 : vector<1x8x16xf32> to vector<8x16xf32>
    %cst_36 = arith.constant dense<0.000000e+00> : vector<8x128xf32>
    %73 = tpu.matmul %72, %70, %cst_36 {dimension_numbers = #tpu.dot_dimension_numbers<[1], [0], [0], [1], [0, 0, 1, 1], [], []>} : vector<8x16xf32>, vector<16x128xf32>, vector<8x128xf32> -> vector<8x128xf32>
    %c0_37 = arith.constant 0 : index
    %c4_38 = arith.constant 4 : index
    %74 = vector.load %arg3[%c0_37, %c4_38] : memref<8x128xf32, #tpu.memory_space<vmem>>, vector<8x1xf32>
    %75 = vector.broadcast %74 : vector<8x1xf32> to vector<8x128xf32>
    %76 = arith.addf %73, %75 : vector<8x128xf32>
    %cst_39 = arith.constant 0.000000e+00 : f32
    %77 = vector.broadcast %cst_39 : f32 to vector<8x128xf32>
    %78 = arith.maximumf %76, %77 : vector<8x128xf32>
    %79 = arith.addf %78, %47 : vector<8x128xf32>
    %cst_40 = arith.constant 0.000000e+00 : f32
    %80 = vector.broadcast %cst_40 : f32 to vector<8x128xf32>
    %81 = arith.maximumf %79, %80 : vector<8x128xf32>
    %c0_41 = arith.constant 0 : index
    %c8 = arith.constant 8 : index
    %82 = vector.load %arg3[%c0_41, %c8] : memref<8x128xf32, #tpu.memory_space<vmem>>, vector<8x1xf32>
    %83 = vector.broadcast %82 : vector<8x1xf32> to vector<8x128xf32>
    %84 = arith.mulf %81, %83 : vector<8x128xf32>
    %85 = arith.addf %50, %84 : vector<8x128xf32>
    %c4_i32_42 = arith.constant 4 : i32
    %86 = tpu.dynamic_rotate %81 by %c4_i32_42 dim 1 : vector<8x128xf32>, i32 -> vector<8x128xf32>
    %cst_43 = arith.constant 0.000000e+00 : f32
    %87 = vector.shape_cast %8 : vector<1x128xi1> to vector<1x128xi1>
    %88 = vector.broadcast %87 : vector<1x128xi1> to vector<8x128xi1>
    %89 = vector.broadcast %cst_43 : f32 to vector<8x128xf32>
    %90 = arith.select %88, %86, %89 : vector<8x128xi1>, vector<8x128xf32>
    %91 = tpu.concatenate %90, %81 in 0 : vector<8x128xf32>, vector<8x128xf32> -> vector<16x128xf32>
    %c5 = arith.constant 5 : index
    %c0_44 = arith.constant 0 : index
    %c0_45 = arith.constant 0 : index
    %92 = vector.load %arg2[%c5, %c0_44, %c0_45] : memref<7x8x16xf32, #tpu.memory_space<vmem>>, vector<1x8x16xf32>
    %93 = vector.shape_cast %92 : vector<1x8x16xf32> to vector<8x16xf32>
    %cst_46 = arith.constant dense<0.000000e+00> : vector<8x128xf32>
    %94 = tpu.matmul %93, %91, %cst_46 {dimension_numbers = #tpu.dot_dimension_numbers<[1], [0], [0], [1], [0, 0, 1, 1], [], []>} : vector<8x16xf32>, vector<16x128xf32>, vector<8x128xf32> -> vector<8x128xf32>
    %c0_47 = arith.constant 0 : index
    %c5_48 = arith.constant 5 : index
    %95 = vector.load %arg3[%c0_47, %c5_48] : memref<8x128xf32, #tpu.memory_space<vmem>>, vector<8x1xf32>
    %96 = vector.broadcast %95 : vector<8x1xf32> to vector<8x128xf32>
    %97 = arith.addf %94, %96 : vector<8x128xf32>
    %cst_49 = arith.constant 0.000000e+00 : f32
    %98 = vector.broadcast %cst_49 : f32 to vector<8x128xf32>
    %99 = arith.maximumf %97, %98 : vector<8x128xf32>
    %c4_i32_50 = arith.constant 4 : i32
    %100 = tpu.dynamic_rotate %99 by %c4_i32_50 dim 1 : vector<8x128xf32>, i32 -> vector<8x128xf32>
    %cst_51 = arith.constant 0.000000e+00 : f32
    %101 = vector.shape_cast %8 : vector<1x128xi1> to vector<1x128xi1>
    %102 = vector.broadcast %101 : vector<1x128xi1> to vector<8x128xi1>
    %103 = vector.broadcast %cst_51 : f32 to vector<8x128xf32>
    %104 = arith.select %102, %100, %103 : vector<8x128xi1>, vector<8x128xf32>
    %105 = tpu.concatenate %104, %99 in 0 : vector<8x128xf32>, vector<8x128xf32> -> vector<16x128xf32>
    %c6 = arith.constant 6 : index
    %c0_52 = arith.constant 0 : index
    %c0_53 = arith.constant 0 : index
    %106 = vector.load %arg2[%c6, %c0_52, %c0_53] : memref<7x8x16xf32, #tpu.memory_space<vmem>>, vector<1x8x16xf32>
    %107 = vector.shape_cast %106 : vector<1x8x16xf32> to vector<8x16xf32>
    %cst_54 = arith.constant dense<0.000000e+00> : vector<8x128xf32>
    %108 = tpu.matmul %107, %105, %cst_54 {dimension_numbers = #tpu.dot_dimension_numbers<[1], [0], [0], [1], [0, 0, 1, 1], [], []>} : vector<8x16xf32>, vector<16x128xf32>, vector<8x128xf32> -> vector<8x128xf32>
    %c0_55 = arith.constant 0 : index
    %c6_56 = arith.constant 6 : index
    %109 = vector.load %arg3[%c0_55, %c6_56] : memref<8x128xf32, #tpu.memory_space<vmem>>, vector<8x1xf32>
    %110 = vector.broadcast %109 : vector<8x1xf32> to vector<8x128xf32>
    %111 = arith.addf %108, %110 : vector<8x128xf32>
    %cst_57 = arith.constant 0.000000e+00 : f32
    %112 = vector.broadcast %cst_57 : f32 to vector<8x128xf32>
    %113 = arith.maximumf %111, %112 : vector<8x128xf32>
    %114 = arith.addf %113, %81 : vector<8x128xf32>
    %cst_58 = arith.constant 0.000000e+00 : f32
    %115 = vector.broadcast %cst_58 : f32 to vector<8x128xf32>
    %116 = arith.maximumf %114, %115 : vector<8x128xf32>
    %c0_59 = arith.constant 0 : index
    %c9 = arith.constant 9 : index
    %117 = vector.load %arg3[%c0_59, %c9] : memref<8x128xf32, #tpu.memory_space<vmem>>, vector<8x1xf32>
    %118 = vector.broadcast %117 : vector<8x1xf32> to vector<8x128xf32>
    %119 = arith.mulf %116, %118 : vector<8x128xf32>
    %120 = arith.addf %85, %119 : vector<8x128xf32>
    %c0_60 = arith.constant 0 : index
    %c0_61 = arith.constant 0 : index
    %121 = vector.load %arg4[%c0_60, %c0_61] : memref<8x128xf32, #tpu.memory_space<vmem>>, vector<8x128xf32>
    tpu.vector_store %arg4[%c0_60, %c0_61], %120 {strides = array<i32>} : memref<8x128xf32, #tpu.memory_space<vmem>>, vector<8x128xf32>,
    return
  }
  func.func @transform_0(%arg0: i32) -> (i32, i32) {
    %c0_i32 = arith.constant 0 : i32
    %c0_i32_0 = arith.constant 0 : i32
    return %c0_i32, %arg0 : i32, i32
  }
  func.func @transform_1(%arg0: i32) -> (i32, i32, i32) {
    %c0_i32 = arith.constant 0 : i32
    %c0_i32_0 = arith.constant 0 : i32
    %c0_i32_1 = arith.constant 0 : i32
    %c0_i32_2 = arith.constant 0 : i32
    return %c0_i32, %c0_i32_0, %c0_i32_1 : i32, i32, i32
  }
  func.func @transform_2(%arg0: i32) -> (i32, i32) {
    %c0_i32 = arith.constant 0 : i32
    %c0_i32_0 = arith.constant 0 : i32
    %c0_i32_1 = arith.constant 0 : i32
    return %c0_i32, %c0_i32_0 : i32, i32
  }
  func.func @transform_3(%arg0: i32) -> (i32, i32) {
    %c0_i32 = arith.constant 0 : i32
    %c0_i32_0 = arith.constant 0 : i32
    return %c0_i32, %arg0 : i32, i32
  }
}

</mosaic_0001>

<bundles_post_ra>
// kernel: tpu_custom_call.1
= control target key start
LH: loop header
LB: loop body
LE: loop exit
PB: predicated region body
PF: predicated region fallthrough
CT: control target
= control target key end

     0   :  { %8 = vsyncpa [#allocation3], 0  ;;  %s1087_s0 = inlined_call_operand.hbm [shape: f32[8,128], index: 0, kind: input, shape index: {}]   ;;  %s1088_s1 = inlined_call_operand.hbm [shape: f32[7,8,16], index: 1, kind: input, shape index: {}]   ;;  %s1089_s2 = inlined_call_operand.hbm [shape: f32[8,128], index: 2, kind: input, shape index: {}]   ;;  %s1090_s3 = inlined_call_operand.hbm [shape: f32[8,128], index: 3, kind: output, shape index: {}]  }
   0x1   :  { %9 = vsyncpa [#allocation6], 0 }
   0x2   :  { %10 = vsyncpa [#allocation4], 0  ;;  %s917_s12 = smov [#allocation5]   ;;  %s823_s16 = scalar_lea.hbm %s1088_s1, 896 }
   0x3   :  { %s26_s13 = sshll.u32 %s917_s12, 4  ;;  %p824_p0 = scmp.ne.s32.totalorder %s1088_s1, %s823_s16  ;;  %s27_s13 = int_to_ptr.vmem [resolvable:$true] %s26_s13 }
   0x4   :  { %p827_p1 = scmp.lt.u32.totalorder %s823_s16, %s1088_s1 }
   0x6   :  { %p829_p2 = pnand %p827_p1, %p824_p0 }
   0x8   :  { %832 = shalt.err (!%p829_p2)
}
   0x9   :  { %s833_s21 = scalar_lea.vmem %s27_s13, 896  ;;  %p838_p4 = scmp.lt.s32.totalorder %s27_s13, %s27_s13 }
   0xa   :  { %p834_p3 = scmp.ne.s32.totalorder %s27_s13, %s833_s21  ;;  %p839_p5 = scmp.lt.s32.totalorder %s833_s21, %s833_s21 }
   0xc   :  { %p840_p6 = por %p839_p5, %p838_p4 }
   0xe   :  { %p841_p7 = pnand %p840_p6, %p834_p3 }
  0x10   :  { %844 = shalt.err (!%p841_p7)
}
  0x11   :  { %s918_s22 = smov 128   ;;  %s919_s23 = smov 8  }
  0x12   :  { %32 = dma.hbm_to_vmem [thread:$0]  %s1088_s1, 896, %s27_s13, [#allocation6], %s918_s22, %s918_s22, %s919_s23  }
  0x13   :  { %s920_s26 = smov [#allocation2]   ;;  %s921_s28 = smov [#allocation7]  }
  0x14   :  { %s17_s27 = sshll.u32 %s920_s26, 4  ;;  %s39_s29 = sshll.u32 %s921_s28, 4  ;;  %s18_s27 = int_to_ptr.vmem [resolvable:$true] %s17_s27  ;;  %s40_s29 = int_to_ptr.vmem [resolvable:$true] %s39_s29 }
  0x15   :  { %s845_s5 = scalar_lea.hbm %s1087_s0, 128 }
  0x16   :  { %p846_p8 = scmp.ne.s32.totalorder %s1087_s0, %s845_s5  ;;  %p849_p9 = scmp.lt.u32.totalorder %s845_s5, %s1087_s0 }
  0x18   :  { %p851_p10 = pnand %p849_p9, %p846_p8 }
  0x1a   :  { %854 = shalt.err (!%p851_p10)
}
  0x1b   :  { %s855_s1 = scalar_lea.vmem %s18_s27, 128  ;;  %p860_p12 = scmp.lt.s32.totalorder %s18_s27, %s18_s27 }
  0x1c   :  { %p856_p11 = scmp.ne.s32.totalorder %s18_s27, %s855_s1  ;;  %p861_p13 = scmp.lt.s32.totalorder %s855_s1, %s855_s1 }
  0x1e   :  { %p862_p0 = por %p861_p13, %p860_p12 }
  0x20   :  { %p863_p1 = pnand %p862_p0, %p856_p11 }
  0x22   :  { %866 = shalt.err (!%p863_p1)
}
  0x23   :  { %20 = dma.hbm_to_vmem [thread:$0]  %s1087_s0, 128, %s18_s27, [#allocation3]  }
  0x24   :  { %s867_s14 = scalar_lea.hbm %s1089_s2, 128 }
  0x25   :  { %p868_p2 = scmp.ne.s32.totalorder %s1089_s2, %s867_s14  ;;  %p871_p3 = scmp.lt.u32.totalorder %s867_s14, %s1089_s2 }
  0x27   :  { %p873_p4 = pnand %p871_p3, %p868_p2 }
  0x29   :  { %876 = shalt.err (!%p873_p4)
}
  0x2a   :  { %s877_s19 = scalar_lea.vmem %s40_s29, 128  ;;  %p882_p6 = scmp.lt.s32.totalorder %s40_s29, %s40_s29 }
  0x2b   :  { %p878_p5 = scmp.ne.s32.totalorder %s40_s29, %s877_s19  ;;  %p883_p7 = scmp.lt.s32.totalorder %s877_s19, %s877_s19 }
  0x2d   :  { %p884_p8 = por %p883_p7, %p882_p6 }
  0x2f   :  { %p885_p9 = pnand %p884_p8, %p878_p5 }
  0x31   :  { %888 = shalt.err (!%p885_p9)
}
  0x32   :  { %42 = dma.hbm_to_vmem [thread:$0]  %s1089_s2, 128, %s40_s29, [#allocation6]  }
  0x33   :  { %911 = dma.done.wait [#allocation3], 128  }
  0x34   :  { %912 = vsyncadd [#allocation3], 4294967168 }
  0x35   :  { %913 = dma.done.wait [#allocation6], 1024  }
  0x36   :  { %914 = vsyncadd [#allocation6], 4294966272  ;;  %v922_v0 = vmov 0.0|0.0   ;;  %vm923_vm0 = vmmov 0   ;;  %v924_v1 = vmov 0.0   ;;  %v925_v2 = vmov 0  }
  0x37   :  { %765 = vmatprep.subr.bf16.mxu0 %v922_v0  ;;  %769 = vmatprep.subr.bf16.mxu1 %v922_v0  ;;  %v58_v3 = vld [vmem:[#allocation2] sm:$0xff]  ;;  %s926_s2 = smov 1   ;;  %v52_v5 = vlaneseq  ;;  %vm927_vm2 = vmmov 1   ;;  %v64_v11 = vld [vmem:[#allocation5] sm:$0xff]  ;;  %vm71_vm4 = vcmask 130048   ;;  %v230_v12 = vld [vmem:[#allocation5 + $0x10] sm:$0xff] }
  0x38   :  { %722 = vmatprep.mubr.msk.f32.mxu0 %vm923_vm0, %v924_v1  ;;  %812 = vset.pattern.permute.xlu0 %v925_v2  ;;  %v1003_v4 = vld [vmem:[#allocation7] sm:$0xff]  ;;  %vm235_vm5 = vcmask 64512   ;;  %v928_v14 = vmov 1   ;;  %v929_v19 = vmov 2   ;;  %v150_v22 = vld [vmem:[#allocation5 + $0x8] sm:$0xff]  ;;  %v930_v31 = vmov 3  }
  0x39   :  { %729 = vmatprep.mubr.msk.f32.mxu1 %vm923_vm0, %v924_v1  ;;  %59 = vrot.lane.b32.xlu0 %v58_v3, %s926_s2  ;;  %v53_v6 = vand.u32 127, %v52_v5  ;;  %s931_s21 = smov 2   ;;  %v322_v38 = vld [vmem:[#allocation5 + $0x18] sm:$0xff]  ;;  %v932_v40 = vmov 4   ;;  %v933_v45 = vmov 5   ;;  %v934_v46 = vmov 6  }
  0x3a   :  { %813 = vset.pattern.permute.xlu1 %v928_v14  ;;  %v935_v47 = vmov 8   ;;  %v405_v50 = vld [vmem:[#allocation5 + $0x20] sm:$0xff]  ;;  %s936_s22 = smov 4   ;;  %v498_v61 = vld [vmem:[#allocation5 + $0x28] sm:$0xff]  ;;  %v937_v62 = vmov 7   ;;  %v938_v5 = vmov 9  }
  0x3b   :  { %v1006_v7 = vand.u32 15, %v53_v6  ;;  %s939_s23 = smov [#allocation8]  }
  0x3c   :  { %s675_s24 = sshll.u32 %s939_s23, 4  ;;  %s676_s24 = int_to_ptr.vmem [resolvable:$true] %s675_s24 }
  0x3d   :  { %68 = vperm.xlu0 %812, %v1003_v4   ;;  %vm55_vm1 = vcmp.ge.s32.totalorder %v1006_v7, 1  ;;  %vm56_vm6 = vcmp.ge.s32.totalorder %v1006_v7, 2  ;;  %vm57_vm8 = vcmp.ge.s32.totalorder %v1006_v7, 4  ;;  %s889_s25 = scalar_lea.vmem %s676_s24, 128  ;;  %p894_p11 = scmp.lt.s32.totalorder %s676_s24, %s676_s24 }
  0x3e   :  { %vm1010_vm3 = vmpackc.low %vm927_vm2, %vm55_vm1  ;;  %p890_p10 = scmp.ne.s32.totalorder %s676_s24, %s889_s25  ;;  %p895_p12 = scmp.lt.s32.totalorder %s889_s25, %s889_s25 }
  0x3f   :  { %vm1038_vm7 = vmpackc.low %vm927_vm2, %vm56_vm6 }
  0x40   :  { %vm1062_vm9 = vmpackc.low %vm927_vm2, %vm57_vm8  ;;  %p896_p13 = por %p895_p12, %p894_p11 }
  0x41   :  { %819 = vset.pattern.permute.xlu0 %v937_v62 }
  0x42   :  { %p897_p0 = pnand %p896_p13, %p890_p10 }
  0xab   :  { %v60_v8 = vpop.permute.xlu0 %59 }
  0xac   :  { %v766_v10 = vpack.c.bf16 %v58_v3, %v60_v8  ;;  %v581_v8 = vld [vmem:[#allocation5 + $0x30] sm:$0xff] }
  0xae   :  { %768 = vmatpush3.bf16.msk.msra.mxu0 %vm1010_vm3, %v766_v10 }
  0xaf   :  { %732 = vmatprep.subr.mxu0 %v924_v1 }
  0xb1   :  { %723 = vmatmul.mubr.msk.f32.vlgmr.msra.gmra.mrb[0].mxu0 %vm71_vm4, %v64_v11 }
  0xb2   :  { %733 = vmatpush3.msra.mxu0 %v58_v3  ;;  %734 = vmatprep.mubr.msk.f32.mxu0 %vm923_vm0, %v924_v1 }
  0xb3   :  { %777 = vmatprep.subr.bf16.mxu0 %v922_v0 }
  0xb5   :  { %735 = vmatmul.mubr.msk.f32.vlgmr.msra.gmra.mrb[2].mxu0 %vm235_vm5, %v230_v12 }
  0xb6   :  { %748 = vmatprep.mubr.msk.f32.mxu0 %vm923_vm0, %v924_v1 }
  0xbc   :  { %v69_v13 = vpop.permute.xlu0 %68 }
 0x184   :  { %v141_v15 = vpop.f32.mrb[0].mxu0 }
 0x185   :  { %v142_v16 = vadd.f32 %v141_v15, %v69_v13  ;;  %v724_v17 = vpop.f32.mrb[1].mxu0 }
 0x187   :  { %v145_v18 = vmax.f32 %v142_v16, 0.0 }
 0x188   :  { %v305_v23 = vpop.f32.mrb[2].mxu0 }
 0x189   :  { %146 = vrot.lane.b32.xlu1 %v145_v18, %s926_s2  ;;  %v736_v24 = vpop.f32.mrb[3].mxu0 }
 0x18d   :  { %152 = vperm.xlu1 %813, %v1003_v4  }
 0x191   :  { %814 = vset.pattern.permute.xlu1 %v929_v19 }
 0x192   :  { %232 = vperm.xlu1 %814, %v1003_v4  }
 0x196   :  { %815 = vset.pattern.permute.xlu1 %v930_v31 }
 0x197   :  { %324 = vperm.xlu1 %815, %v1003_v4  }
 0x19b   :  { %816 = vset.pattern.permute.xlu1 %v932_v40 }
 0x19c   :  { %407 = vperm.xlu1 %816, %v1003_v4  }
 0x1a0   :  { %817 = vset.pattern.permute.xlu1 %v933_v45 }
 0x1a1   :  { %500 = vperm.xlu1 %817, %v1003_v4  }
 0x1a5   :  { %818 = vset.pattern.permute.xlu1 %v934_v46 }
 0x1a6   :  { %583 = vperm.xlu1 %818, %v1003_v4  }
 0x1aa   :  { %820 = vset.pattern.permute.xlu1 %v935_v47 }
 0x1ab   :  { %487 = vperm.xlu1 %820, %v1003_v4  }
 0x1af   :  { %821 = vset.pattern.permute.xlu1 %v938_v5 }
 0x1b0   :  { %663 = vperm.xlu1 %821, %v1003_v4  }
 0x1fb   :  { %v147_v20 = vpop.permute.xlu1 %146 }
 0x1fc   :  { %v770_v21 = vpack.c.bf16 %v145_v18, %v147_v20 }
 0x1fe   :  { %772 = vmatpush3.bf16.msk.msra.mxu1 %vm1010_vm3, %v770_v21 }
 0x1ff   :  { %773 = vmatprep.subr.bf16.mxu1 %v922_v0 }
 0x201   :  { %730 = vmatmul.mubr.msk.f32.vlgmr.msra.gmra.mrb[0].mxu1 %vm71_vm4, %v150_v22 }
 0x202   :  { %741 = vmatprep.mubr.msk.f32.mxu1 %vm923_vm0, %v924_v1 }
 0x20c   :  { %v153_v25 = vpop.permute.xlu1 %152 }
 0x211   :  { %v233_v26 = vpop.permute.xlu1 %232 }
 0x212   :  { %v306_v30 = vadd.f32 %v305_v23, %v233_v26 }
 0x216   :  { %v325_v39 = vpop.permute.xlu1 %324 }
 0x21b   :  { %v408_v51 = vpop.permute.xlu1 %407 }
 0x220   :  { %v501_v63 = vpop.permute.xlu1 %500 }
 0x225   :  { %v584_v9 = vpop.permute.xlu1 %583 }
 0x22a   :  { %v488_v13 = vpop.permute.xlu1 %487 }
 0x2d4   :  { %v224_v27 = vpop.f32.mrb[0].mxu1 }
 0x2d5   :  { %v225_v28 = vadd.f32 %v224_v27, %v153_v25  ;;  %v731_v29 = vpop.f32.mrb[1].mxu1 }
 0x2d7   :  { %v228_v32 = vmax.f32 %v225_v28, 0.0 }
 0x2d9   :  { %v309_v33 = vadd.f32 %v306_v30, %v228_v32 }
 0x2db   :  { %v1033_v34 = vmax.f32 %v309_v33, 0.0 }
 0x2dd   :  { %316 = vrot.lane.b32.xlu0 %v1033_v34, %s931_s21 }
 0x34f   :  { %v317_v35 = vpop.permute.xlu0 %316 }
 0x350   :  { %v774_v37 = vpack.c.bf16 %v1033_v34, %v317_v35 }
 0x352   :  { %776 = vmatpush3.bf16.msk.msra.mxu1 %vm1038_vm7, %v774_v37 }
 0x353   :  { %781 = vmatprep.subr.bf16.mxu1 %v922_v0 }
 0x355   :  { %742 = vmatmul.mubr.msk.f32.vlgmr.msra.gmra.mrb[2].mxu1 %vm71_vm4, %v322_v38 }
 0x356   :  { %755 = vmatprep.mubr.msk.f32.mxu1 %vm923_vm0, %v924_v1 }
 0x428   :  { %v396_v41 = vpop.f32.mrb[2].mxu1 }
 0x429   :  { %v397_v42 = vadd.f32 %v396_v41, %v325_v39  ;;  %v743_v43 = vpop.f32.mrb[3].mxu1 }
 0x42b   :  { %v400_v44 = vmax.f32 %v397_v42, 0.0 }
 0x42d   :  { %401 = vrot.lane.b32.xlu0 %v400_v44, %s931_s21 }
 0x49f   :  { %v402_v48 = vpop.permute.xlu0 %401 }
 0x4a0   :  { %v778_v49 = vpack.c.bf16 %v400_v44, %v402_v48 }
 0x4a2   :  { %780 = vmatpush3.bf16.msk.msra.mxu0 %vm1038_vm7, %v778_v49 }
 0x4a3   :  { %785 = vmatprep.subr.bf16.mxu0 %v922_v0 }
 0x4a5   :  { %749 = vmatmul.mubr.msk.f32.vlgmr.msra.gmra.mrb[4].mxu0 %vm71_vm4, %v405_v50 }
 0x4a6   :  { %762 = vmatprep.mubr.msk.f32.mxu0 %vm923_vm0, %v924_v1 }
 0x578   :  { %v479_v52 = vpop.f32.mrb[4].mxu0 }
 0x579   :  { %v480_v53 = vadd.f32 %v479_v52, %v408_v51  ;;  %v750_v54 = vpop.f32.mrb[5].mxu0 }
 0x57b   :  { %v483_v55 = vmax.f32 %v480_v53, 0.0 }
 0x57d   :  { %v484_v56 = vadd.f32 %v483_v55, %v1033_v34 }
 0x57f   :  { %v485_v57 = vmax.f32 %v484_v56, 0.0 }
 0x581   :  { %492 = vrot.lane.b32.xlu0 %v485_v57, %s936_s22  ;;  %v490_v18 = vmul.f32 %v488_v13, %v485_v57 }
 0x5f3   :  { %v493_v58 = vpop.permute.xlu0 %492 }
 0x5f4   :  { %v782_v60 = vpack.c.bf16 %v485_v57, %v493_v58 }
 0x5f6   :  { %784 = vmatpush3.bf16.msk.msra.mxu1 %vm1062_vm9, %v782_v60 }
 0x5f9   :  { %756 = vmatmul.mubr.msk.f32.vlgmr.msra.gmra.mrb[4].mxu1 %vm71_vm4, %v498_v61 }
 0x6cc   :  { %v572_v0 = vpop.f32.mrb[4].mxu1 }
 0x6cd   :  { %v573_v1 = vadd.f32 %v572_v0, %v501_v63  ;;  %v757_v2 = vpop.f32.mrb[5].mxu1 }
 0x6cf   :  { %v576_v3 = vmax.f32 %v573_v1, 0.0 }
 0x6d1   :  { %577 = vrot.lane.b32.xlu0 %v576_v3, %s936_s22 }
 0x6d5   :  { %312 = vperm.xlu0 %819, %v1003_v4   ;;  %v664_v4 = vpop.permute.xlu1 %663 }
 0x6d9   :  { %822 = vset.pattern.permute.xlu0 %v938_v5 }
 0x743   :  { %v578_v6 = vpop.permute.xlu0 %577 }
 0x744   :  { %v786_v7 = vpack.c.bf16 %v576_v3, %v578_v6 }
 0x746   :  { %788 = vmatpush3.bf16.msk.msra.mxu0 %vm1062_vm9, %v786_v7 }
 0x749   :  { %763 = vmatmul.mubr.msk.f32.vlgmr.msra.gmra.mrb[6].mxu0 %vm71_vm4, %v581_v8 }
 0x754   :  { %v313_v14 = vpop.permute.xlu0 %312 }
 0x755   :  { %v315_v16 = vmul.f32 %v313_v14, %v1033_v34 }
 0x757   :  { %v491_v20 = vadd.f32 %v490_v18, %v315_v16 }
 0x81c   :  { %v655_v10 = vpop.f32.mrb[6].mxu0 }
 0x81d   :  { %v656_v11 = vadd.f32 %v655_v10, %v584_v9  ;;  %v764_v12 = vpop.f32.mrb[7].mxu0 }
 0x81f   :  { %v659_v15 = vmax.f32 %v656_v11, 0.0 }
 0x821   :  { %v660_v17 = vadd.f32 %v659_v15, %v485_v57 }
 0x823   :  { %v661_v19 = vmax.f32 %v660_v17, 0.0 }
 0x825   :  { %v666_v21 = vmul.f32 %v664_v4, %v661_v19 }
 0x827   :  { %v667_v22 = vadd.f32 %v666_v21, %v491_v20 }
 0x829   :  { %668 = vst [vmem:[#allocation8] sm:$0xff] %v667_v22 }
 0x82a   :  { %900 = shalt.err (!%p897_p0)
}
 0x82b   :  { %s901_s28 = scalar_lea.hbm %s1090_s3, 128 }
 0x82c   :  { %p902_p1 = scmp.ne.s32.totalorder %s1090_s3, %s901_s28  ;;  %p905_p2 = scmp.lt.u32.totalorder %s901_s28, %s1090_s3 }
 0x82e   :  { %p907_p3 = pnand %p905_p2, %p902_p1 }
 0x830   :  { %910 = shalt.err (!%p907_p3)
}
 0x831   :  { %678 = dma.vmem_to_hbm [thread:$0]  %s676_s24, 128, %s1090_s3, [#allocation4]  }
 0x832   :  { %915 = dma.done.wait [#allocation4], 128  }
 0x833   :  { %916 = vsyncadd [#allocation4], 4294967168 }
 0x834   :  { %682 = vsyncpa [#allocation3], 1 }
 0x835   :  { %683 = vsyncpa [#allocation6], 1 }
 0x836   :  { %684 = vsyncpa [#allocation4], 1 }

</bundles_post_ra>
